<compile_context>
chip_gen: v7x
topology: tpu7x:2x2x1
jax: 0.10.0
libtpu: 0.0.40
codegen_flags: <defaults>
</compile_context>

<pallas_src>
import jax
import jax.numpy as jnp
from jax.experimental import pallas as pl
from jax.experimental.pallas import tpu as pltpu


def _leaky_relu(x, slope):
    return jnp.where(x >= 0, x, slope * x)


def _round_up(n, m):
    return ((n + m - 1) // m) * m


def cond_upsampler_kernel(x_ref, w1t_ref, b1_ref, w2t_ref, b2_ref, o_ref):
    # x_ref:   (tm, cond_length)            compute dtype (f32 or bf16)
    # w1t_ref: (cond_length, hidden)        compute dtype
    # b1_ref:  (1, hidden)                  f32
    # w2t_ref: (hidden, target_dim)         compute dtype
    # b2_ref:  (1, target_dim)              f32
    # o_ref:   (tm, target_dim)             output dtype
    x = x_ref[...]

    # linear1: h = x @ W1^T + b1   (MXU, f32 accumulation; epilogue on f32)
    h = jnp.dot(x, w1t_ref[...], preferred_element_type=jnp.float32)
    h = _leaky_relu(h + b1_ref[...], 0.4)

    # linear2: y = h @ W2^T + b2   (cast activations back to compute dtype
    # for the MXU; accumulate and apply epilogue in f32)
    y = jnp.dot(h.astype(w2t_ref.dtype), w2t_ref[...],
                preferred_element_type=jnp.float32)
    y = _leaky_relu(y + b2_ref[...], 0.4)

    o_ref[...] = y.astype(o_ref.dtype)


def cond_upsampler(x, w1, b1, w2, b2, *, tm=256, compute_dtype=None):
    """x: (batch, seq, cond_length) -> (batch, seq, target_dim).

    w1: (hidden, cond_length), b1: (hidden,)
    w2: (target_dim, hidden),  b2: (target_dim,)
    tm: row tile (rows = batch*seq).  Tune per generation:
        v5e ~128-512, v7x ~512-1024, v6e up to 1024-2048.
    compute_dtype: dtype fed to the MXU (e.g. jnp.bfloat16).  Accumulation,
        bias add and leaky_relu always run in f32; output keeps x.dtype.
    """
    batch, seq, cond_length = x.shape
    hidden = w1.shape[0]          # target_dim // 2
    target_dim = w2.shape[0]

    if compute_dtype is None:
        compute_dtype = x.dtype
    out_dtype = x.dtype

    M = batch * seq
    # Clamp the row tile to the problem size; keep it a multiple of 8 sublanes.
    tm = max(8, min(_round_up(tm, 8), _round_up(M, 8)))

    # One-time host-side layout work: flatten rows, pre-transpose weights so
    # the contraction dim is presented naturally to the MXU, cast compute dtype.
    x2d = x.reshape(M, cond_length).astype(compute_dtype)
    w1t = w1.T.astype(compute_dtype)            # (cond_length, hidden)
    w2t = w2.T.astype(compute_dtype)            # (hidden, target_dim)
    b1_2d = b1.reshape(1, hidden).astype(jnp.float32)
    b2_2d = b2.reshape(1, target_dim).astype(jnp.float32)

    grid = (pl.cdiv(M, tm),)

    # VMEM budget: double-buffered x/out tiles + resident weights/biases.
    cbytes = jnp.dtype(compute_dtype).itemsize
    obytes = jnp.dtype(out_dtype).itemsize
    est = (2 * tm * cond_length * cbytes          # x tiles (double buffered)
           + 2 * tm * target_dim * obytes         # out tiles (double buffered)
           + (cond_length * hidden + hidden * target_dim) * cbytes
           + (hidden + target_dim) * 4
           + 2 * tm * max(hidden, target_dim) * 4)  # f32 intermediates headroom
    vmem_limit_bytes = int(min(64 * 2**20, max(32 * 2**20, 2 * est)))

    out2d = pl.pallas_call(
        cond_upsampler_kernel,
        out_shape=jax.ShapeDtypeStruct((M, target_dim), out_dtype),
        grid_spec=pltpu.PrefetchScalarGridSpec(
            num_scalar_prefetch=0,
            grid=grid,
            in_specs=[
                pl.BlockSpec((tm, cond_length), lambda i: (i, 0)),
                # Weights/biases: constant index_map -> stay VMEM-resident.
                pl.BlockSpec((cond_length, hidden), lambda i: (0, 0)),
                pl.BlockSpec((1, hidden), lambda i: (0, 0)),
                pl.BlockSpec((hidden, target_dim), lambda i: (0, 0)),
                pl.BlockSpec((1, target_dim), lambda i: (0, 0)),
            ],
            out_specs=pl.BlockSpec((tm, target_dim), lambda i: (i, 0)),
        ),
        compiler_params=pltpu.CompilerParams(
            dimension_semantics=("parallel",),
            vmem_limit_bytes=vmem_limit_bytes,
        ),
    )(x2d, w1t, b1_2d, w2t, b2_2d)

    return out2d.reshape(batch, seq, target_dim)


def init_params(key, cond_length, target_dim, dtype=jnp.float32):
    """Deterministic parameter init mirroring nn.Linear's U(-1/sqrt(fan_in), ..)."""
    hidden = target_dim // 2
    k1, k2, k3, k4 = jax.random.split(key, 4)
    bound1 = 1.0 / (cond_length ** 0.5)
    bound2 = 1.0 / (hidden ** 0.5)
    w1 = jax.random.uniform(k1, (hidden, cond_length), dtype, -bound1, bound1)
    b1 = jax.random.uniform(k2, (hidden,), dtype, -bound1, bound1)
    w2 = jax.random.uniform(k3, (target_dim, hidden), dtype, -bound2, bound2)
    b2 = jax.random.uniform(k4, (target_dim,), dtype, -bound2, bound2)
    return w1, b1, w2, b2


def _reference(x, w1, b1, w2, b2):
    h = _leaky_relu(jnp.einsum("bsc,hc->bsh", x, w1) + b1, 0.4)
    y = _leaky_relu(jnp.einsum("bsh,th->bst", h, w2) + b2, 0.4)
    return y


if __name__ == "__main__":
    batch, seq = 2, 8
    cond_length, target_dim = 32, 16   # hidden = target_dim // 2 = 8

    key = jax.random.PRNGKey(0)
    kx, kp = jax.random.split(key)
    x = jax.random.normal(kx, (batch, seq, cond_length), jnp.float32)
    w1, b1, w2, b2 = init_params(kp, cond_length, target_dim)

    ref = _reference(x, w1, b1, w2, b2)

    # f32 compute path (exact semantics of the PyTorch module).
    out = cond_upsampler(x, w1, b1, w2, b2)
    out = jax.block_until_ready(out)
    assert out.shape == (batch, seq, target_dim)
    assert jnp.allclose(out, ref, atol=1e-5, rtol=1e-5)

    # bf16 compute path (f32 accumulation + f32 epilogue) — looser tolerance.
    out_bf16 = cond_upsampler(x, w1, b1, w2, b2, compute_dtype=jnp.bfloat16)
    out_bf16 = jax.block_until_ready(out_bf16)
    assert out_bf16.shape == (batch, seq, target_dim)
    assert jnp.allclose(out_bf16, ref, atol=5e-2, rtol=5e-2)

    print("KERNEL_OK")
</pallas_src>

<mosaic_0001>
module attributes {stable_mosaic.version = 11 : i64} {
  func.func @cond_upsampler_kernel(%arg0: i32, %arg1: memref<16x32xf32, #tpu.memory_space<vmem>>, %arg2: memref<32x8xf32, #tpu.memory_space<vmem>>, %arg3: memref<1x8xf32, #tpu.memory_space<vmem>>, %arg4: memref<8x16xf32, #tpu.memory_space<vmem>>, %arg5: memref<1x16xf32, #tpu.memory_space<vmem>>, %arg6: memref<16x16xf32, #tpu.memory_space<vmem>>) attributes {dimension_semantics = [#tpu.dimension_semantics<parallel>], iteration_bounds = array<i64: 1>, scalar_prefetch = 0 : i64, scratch_operands = 0 : i64, tpu.core_type = #tpu.core_type<tc>, window_params = [{transform_indices = @transform_0, window_bounds = array<i64: 16, 32>}, {pipeline_mode = #tpu.pipeline_mode<synchronous>, transform_indices = @transform_1, window_bounds = array<i64: 32, 8>}, {pipeline_mode = #tpu.pipeline_mode<synchronous>, transform_indices = @transform_2, window_bounds = array<i64: 1, 8>}, {pipeline_mode = #tpu.pipeline_mode<synchronous>, transform_indices = @transform_3, window_bounds = array<i64: 8, 16>}, {pipeline_mode = #tpu.pipeline_mode<synchronous>, transform_indices = @transform_4, window_bounds = array<i64: 1, 16>}, {transform_indices = @transform_5, window_bounds = array<i64: 16, 16>}]} {
    %c0 = arith.constant 0 : index
    %c0_0 = arith.constant 0 : index
    %0 = vector.load %arg1[%c0, %c0_0] : memref<16x32xf32, #tpu.memory_space<vmem>>, vector<16x32xf32>
    %c0_1 = arith.constant 0 : index
    %c0_2 = arith.constant 0 : index
    %1 = vector.load %arg2[%c0_1, %c0_2] : memref<32x8xf32, #tpu.memory_space<vmem>>, vector<32x8xf32>
    %cst = arith.constant dense<0.000000e+00> : vector<16x8xf32>
    %2 = tpu.matmul %0, %1, %cst {dimension_numbers = #tpu.dot_dimension_numbers<[1], [0], [0], [1], [0, 0, 1, 1], [], []>} : vector<16x32xf32>, vector<32x8xf32>, vector<16x8xf32> -> vector<16x8xf32>
    %c0_3 = arith.constant 0 : index
    %c0_4 = arith.constant 0 : index
    %3 = vector.load %arg3[%c0_3, %c0_4] : memref<1x8xf32, #tpu.memory_space<vmem>>, vector<1x8xf32>
    %4 = vector.broadcast %3 : vector<1x8xf32> to vector<16x8xf32>
    %5 = arith.addf %2, %4 : vector<16x8xf32>
    %cst_5 = arith.constant 0.000000e+00 : f32
    %6 = vector.broadcast %cst_5 : f32 to vector<16x8xf32>
    %7 = arith.cmpf oge, %5, %6 : vector<16x8xf32>
    %cst_6 = arith.constant 4.000000e-01 : f32
    %8 = vector.broadcast %cst_6 : f32 to vector<16x8xf32>
    %9 = arith.mulf %8, %5 : vector<16x8xf32>
    %10 = arith.select %7, %5, %9 : vector<16x8xi1>, vector<16x8xf32>
    %c0_7 = arith.constant 0 : index
    %c0_8 = arith.constant 0 : index
    %11 = vector.load %arg4[%c0_7, %c0_8] : memref<8x16xf32, #tpu.memory_space<vmem>>, vector<8x16xf32>
    %cst_9 = arith.constant dense<0.000000e+00> : vector<16x16xf32>
    %12 = tpu.matmul %10, %11, %cst_9 {dimension_numbers = #tpu.dot_dimension_numbers<[1], [0], [0], [1], [0, 0, 1, 1], [], []>} : vector<16x8xf32>, vector<8x16xf32>, vector<16x16xf32> -> vector<16x16xf32>
    %c0_10 = arith.constant 0 : index
    %c0_11 = arith.constant 0 : index
    %13 = vector.load %arg5[%c0_10, %c0_11] : memref<1x16xf32, #tpu.memory_space<vmem>>, vector<1x16xf32>
    %14 = vector.broadcast %13 : vector<1x16xf32> to vector<16x16xf32>
    %15 = arith.addf %12, %14 : vector<16x16xf32>
    %cst_12 = arith.constant 0.000000e+00 : f32
    %16 = vector.broadcast %cst_12 : f32 to vector<16x16xf32>
    %17 = arith.cmpf oge, %15, %16 : vector<16x16xf32>
    %cst_13 = arith.constant 4.000000e-01 : f32
    %18 = vector.broadcast %cst_13 : f32 to vector<16x16xf32>
    %19 = arith.mulf %18, %15 : vector<16x16xf32>
    %20 = arith.select %17, %15, %19 : vector<16x16xi1>, vector<16x16xf32>
    %c0_14 = arith.constant 0 : index
    %c0_15 = arith.constant 0 : index
    %21 = vector.load %arg6[%c0_14, %c0_15] : memref<16x16xf32, #tpu.memory_space<vmem>>, vector<16x16xf32>
    tpu.vector_store %arg6[%c0_14, %c0_15], %20 {strides = array<i32>} : memref<16x16xf32, #tpu.memory_space<vmem>>, vector<16x16xf32>,
    return
  }
  func.func @transform_0(%arg0: i32) -> (i32, i32) {
    %c0_i32 = arith.constant 0 : i32
    %c0_i32_0 = arith.constant 0 : i32
    return %arg0, %c0_i32 : i32, i32
  }
  func.func @transform_1(%arg0: i32) -> (i32, i32) {
    %c0_i32 = arith.constant 0 : i32
    %c0_i32_0 = arith.constant 0 : i32
    %c0_i32_1 = arith.constant 0 : i32
    return %c0_i32, %c0_i32_0 : i32, i32
  }
  func.func @transform_2(%arg0: i32) -> (i32, i32) {
    %c0_i32 = arith.constant 0 : i32
    %c0_i32_0 = arith.constant 0 : i32
    %c0_i32_1 = arith.constant 0 : i32
    return %c0_i32, %c0_i32_0 : i32, i32
  }
  func.func @transform_3(%arg0: i32) -> (i32, i32) {
    %c0_i32 = arith.constant 0 : i32
    %c0_i32_0 = arith.constant 0 : i32
    %c0_i32_1 = arith.constant 0 : i32
    return %c0_i32, %c0_i32_0 : i32, i32
  }
  func.func @transform_4(%arg0: i32) -> (i32, i32) {
    %c0_i32 = arith.constant 0 : i32
    %c0_i32_0 = arith.constant 0 : i32
    %c0_i32_1 = arith.constant 0 : i32
    return %c0_i32, %c0_i32_0 : i32, i32
  }
  func.func @transform_5(%arg0: i32) -> (i32, i32) {
    %c0_i32 = arith.constant 0 : i32
    %c0_i32_0 = arith.constant 0 : i32
    return %arg0, %c0_i32 : i32, i32
  }
}

</mosaic_0001>

<bundles_post_ra>
// kernel: tpu_custom_call.1
= control target key start
LH: loop header
LB: loop body
LE: loop exit
PB: predicated region body
PF: predicated region fallthrough
CT: control target
= control target key end

     0   :  { %vm34_vm0 = vcmask 261120   ;;  %s375_s0 = inlined_call_operand.vmem [shape: f32[16,32], index: 0, kind: input, shape index: {}]   ;;  %s376_s1 = inlined_call_operand.vmem [shape: f32[32,8], index: 1, kind: input, shape index: {}]   ;;  %s377_s2 = inlined_call_operand.vmem [shape: f32[1,8], index: 2, kind: input, shape index: {}]   ;;  %s378_s3 = inlined_call_operand.vmem [shape: f32[8,16], index: 3, kind: input, shape index: {}]   ;;  %s379_s4 = inlined_call_operand.vmem [shape: f32[1,16], index: 4, kind: input, shape index: {}]   ;;  %s380_s5 = inlined_call_operand.hbm [shape: f32[16,16], index: 5, kind: output, shape index: {}]  }
   0x1   :  { %v23_v0 = vld [vmem:[%s376_s1] sm:$0xff]  ;;  %v24_v1 = vld [vmem:[%s376_s1 + $0x8] sm:$0xff]  ;;  %v25_v2 = vld [vmem:[%s376_s1 + $0x10] sm:$0xff] }
   0x2   :  { %v268_v3 = vpack.c.bf16 %v24_v1, %v23_v0  ;;  %v26_v4 = vld [vmem:[%s376_s1 + $0x18] sm:$0xff]  ;;  %v21_v5 = vld [vmem:[%s375_s0] sm:$0xff] }
   0x3   :  { %v272_v6 = vpack.c.bf16 %v26_v4, %v25_v2  ;;  %260 = vmatprep.mubr.msk.f32.mxu0 %vm34_vm0, %v21_v5 }
   0x4   :  { %10 = vsyncpa [#allocation3], 0  ;;  %269 = vmatprep.subr.bf16.mxu0 %v268_v3  ;;  %v22_v7 = vld [vmem:[%s375_s0 + $0x8] sm:$0xff]  ;;  %v122_v8 = vld [vmem:[%s378_s3] sm:$0xff]  ;;  %vm130_vm3 = vcmask 64512   ;;  %vm218_vm5 = vcmask 130048  }
   0x5   :  { %271 = vmatpush3.bf16.msra.mxu0 %v268_v3  ;;  %263 = vmatprep.subr.mxu1 %v122_v8  ;;  %v237_v9 = vld [vmem:[%s377_s2] ss:$0 sm:$0xff]  ;;  %s303_s2 = smov [#allocation2]  }
   0x6   :  { %273 = vmatprep.subr.bf16.mxu0 %v272_v6  ;;  %264 = vmatpush3.msra.mxu1 %v122_v8  ;;  %v240_v18 = vld [vmem:[%s379_s4] ss:$0 sm:$0xff]  ;;  %s226_s8 = sshll.u32 %s303_s2, 4  ;;  %s227_s8 = int_to_ptr.vmem [resolvable:$true] %s226_s8 }
   0x7   :  { %s279_s9 = scalar_lea.vmem %s227_s8, 256  ;;  %p284_p1 = scmp.lt.s32.totalorder %s227_s8, %s227_s8 }
   0x8   :  { %p280_p0 = scmp.ne.s32.totalorder %s227_s8, %s279_s9  ;;  %p285_p2 = scmp.lt.s32.totalorder %s279_s9, %s279_s9 }
   0x9   :  { %275 = vmatpush3.bf16.msra.mxu0 %v272_v6 }
   0xa   :  { %p286_p3 = por %p285_p2, %p284_p1 }
   0xc   :  { %261 = vmatmul.mubr.msk.f32.vlgmr.msra.gmra.mrb[0].mxu0 %vm34_vm0, %v22_v7  ;;  %p287_p4 = pnand %p286_p3, %p280_p0 }
  0xdf   :  { %v262_v10 = vpop.f32.mrb[0].mxu0 }
  0xe0   :  { %v113_v11 = vadd.f32 %v262_v10, %v237_v9  ;;  %v107_v12 = vpop.f32.mrb[1].mxu0 }
  0xe1   :  { %v108_v13 = vadd.f32 %v237_v9, %v107_v12 }
  0xe2   :  { %v119_v14 = vmul.f32 0.4, %v113_v11  ;;  %vm117_vm1 = vcmp.ge.f32.partialorder %v113_v11, 0.0 }
  0xe3   :  { %vm116_vm2 = vcmp.ge.f32.partialorder %v108_v13, 0.0  ;;  %v118_v15 = vmul.f32 0.4, %v108_v13 }
  0xe4   :  { %v121_v17 = vsel %vm117_vm1, %v113_v11, %v119_v14 }
  0xe5   :  { %v120_v16 = vsel %vm116_vm2, %v108_v13, %v118_v15 }
  0xe6   :  { %265 = vmatprep.mubr.msk.f32.mxu1 %vm130_vm3, %v120_v16 }
  0xe7   :  { %266 = vmatmul.mubr.msk.f32.vlgmr.msra.gmra.mrb[0].mxu1 %vm130_vm3, %v121_v17 }
 0x1ba   :  { %v267_v19 = vpop.f32.mrb[0].mxu1 }
 0x1bb   :  { %v209_v20 = vadd.f32 %v267_v19, %v240_v18  ;;  %v203_v21 = vpop.f32.mrb[1].mxu1 }
 0x1bc   :  { %v204_v22 = vadd.f32 %v240_v18, %v203_v21 }
 0x1bd   :  { %vm213_vm4 = vcmp.ge.f32.partialorder %v209_v20, 0.0  ;;  %v215_v23 = vmul.f32 0.4, %v209_v20 }
 0x1be   :  { %vm212_vm6 = vcmp.ge.f32.partialorder %v204_v22, 0.0  ;;  %v214_v24 = vmul.f32 0.4, %v204_v22 }
 0x1bf   :  { %v217_v25 = vsel %vm213_vm4, %v209_v20, %v215_v23 }
 0x1c0   :  { %220 = vst.msk [vmem:[#allocation2 + $0x8] sm:$0xff] %vm218_vm5, %v217_v25  ;;  %v216_v26 = vsel %vm212_vm6, %v204_v22, %v214_v24 }
 0x1c1   :  { %219 = vst.msk [vmem:[#allocation2] sm:$0xff] %vm218_vm5, %v216_v26 }
 0x1c2   :  { %290 = shalt.err (!%p287_p4)
}
 0x1c3   :  { %s291_s11 = scalar_lea.hbm %s380_s5, 256 }
 0x1c4   :  { %p292_p5 = scmp.ne.s32.totalorder %s380_s5, %s291_s11  ;;  %p295_p6 = scmp.lt.u32.totalorder %s291_s11, %s380_s5 }
 0x1c6   :  { %p297_p7 = pnand %p295_p6, %p292_p5 }
 0x1c8   :  { %300 = shalt.err (!%p297_p7)
}
 0x1c9   :  { %s304_s16 = smov 128   ;;  %s305_s17 = smov 8  }
 0x1ca   :  { %232 = dma.vmem_to_hbm [thread:$0]  %s227_s8, 256, %s380_s5, [#allocation3], %s304_s16, %s304_s16, %s305_s17  }
 0x1cb   :  { %301 = dma.done.wait [#allocation3], 256  }
 0x1cc   :  { %302 = vsyncadd [#allocation3], 4294967040 }
 0x1cd   :  { %236 = vsyncpa [#allocation3], 1 }

</bundles_post_ra>
